<compile_context>
chip_gen: v5e
topology: v5e:2x2
jax: 0.10.0
libtpu: 0.0.40
codegen_flags: <defaults>
</compile_context>

<pallas_src>
import functools

import numpy as np
import jax
import jax.numpy as jnp
from jax.experimental import pallas as pl
from jax.experimental.pallas import tpu as pltpu


def _round_up(x, m):
    return ((x + m - 1) // m) * m


def _linear_relu_kernel(x_ref, w_ref, b_ref, o_ref, *, compute_dtype):
    """One (tm, Nb) output block per grid step: out = relu(x @ W + b)."""
    x = x_ref[...]
    w = w_ref[...]
    if compute_dtype is not None:
        # In-kernel cast (cheap VPU op, hidden under the x DMA) instead of an
        # extra un-hidden HBM pass in the XLA wrapper.
        x = x.astype(compute_dtype)
        w = w.astype(compute_dtype)
    out = jnp.dot(x, w, preferred_element_type=jnp.float32)   # MXU, f32 accum
    out = out + b_ref[...].astype(jnp.float32)                # (1, Nb) broadcast
    o_ref[...] = jnp.maximum(out, 0.0).astype(o_ref.dtype)


@functools.partial(
    jax.jit,
    static_argnames=("block_m", "compute_dtype", "out_dtype",
                     "single_buffer_consts", "vmem_limit_bytes"),
)
def text_nn_forward(x, w, b, *, block_m=512, compute_dtype=None, out_dtype=None,
                    single_buffer_consts=True, vmem_limit_bytes=None):
    """relu(x @ w + b).

    x: [M, K]  (batch, input_dim)
    w: [K, N]  (input_dim, output_dim) -- transposed vs. PyTorch's [out, in];
               may be stored persistently in bf16 (recommended on v6e/v7x).
    b: [N]
    returns [M, N] (dtype = x.dtype unless out_dtype is given).
    """
    M, K = x.shape
    Kw, N = w.shape
    assert K == Kw, "weight must be [input_dim, output_dim]"
    assert b.shape == (N,)

    out_dtype = np.dtype(x.dtype) if out_dtype is None else np.dtype(out_dtype)

    # A persistently low-precision weight (cast once, outside the hot path)
    # sets the compute dtype; x is then cast in-kernel, never in the wrapper.
    if compute_dtype is None and np.dtype(w.dtype) != np.dtype(x.dtype):
        compute_dtype = np.dtype(w.dtype)
    if compute_dtype is not None:
        compute_dtype = np.dtype(compute_dtype)

    x_bytes = np.dtype(x.dtype).itemsize
    w_bytes = np.dtype(w.dtype).itemsize
    o_bytes = out_dtype.itemsize

    # 16-sublane alignment for 16-bit compute packing / full 256x256 MXU passes.
    two_byte = (compute_dtype is not None and compute_dtype.itemsize == 2) or x_bytes == 2
    align = 16 if two_byte else 8

    # --- M tile: as large as the VMEM budget comfortably allows.
    block_m = max(int(block_m), align)
    tm = min(_round_up(block_m, align), _round_up(M, align))

    def vmem_needed(tm_, nb_, w_bufs_):
        return (2 * tm_ * K * x_bytes            # x tile, double-buffered
                + 2 * tm_ * nb_ * o_bytes        # out tile, double-buffered
                + tm_ * nb_ * 4                  # f32 matmul/ReLU temporary
                + w_bufs_ * K * nb_ * w_bytes    # weight block(s)
                + 2 * nb_ * 4)                   # bias

    VMEM_BUDGET = 44 << 20                       # stays under v7x's 64 MiB physical
    while tm > align and vmem_needed(tm, N, 2) > VMEM_BUDGET:
        tm = max(align, _round_up(tm // 2, align))

    m_blocks = pl.cdiv(M, tm)

    # --- N split: only when a single M block would otherwise leave the second
    # TensorCore (v7x megacore) idle.  Neutral on v5e/v6e (still lane-dense).
    n_split = 2 if (m_blocks == 1 and N % 256 == 0) else 1
    nb = N // n_split

    # Constant blocks (index map pinned at (0, 0)) only need one buffer.
    const_mode = pl.Buffered(1) if (single_buffer_consts and n_split == 1) else None
    const_kwargs = {} if const_mode is None else {"pipeline_mode": const_mode}

    if vmem_limit_bytes is None:
        w_bufs = 1 if const_mode is not None else 2
        need = vmem_needed(tm, nb, w_bufs)
        vmem_limit_bytes = int(min(max(need + (8 << 20), 32 << 20), 48 << 20))

    b2d = b.reshape(1, N)

    cost = pl.CostEstimate(
        flops=2 * M * K * N,
        transcendentals=0,
        bytes_accessed=(M * K * x_bytes + K * N * w_bytes
                        + N * np.dtype(b.dtype).itemsize + M * N * o_bytes),
    )

    kernel = functools.partial(_linear_relu_kernel, compute_dtype=compute_dtype)

    return pl.pallas_call(
        kernel,
        out_shape=jax.ShapeDtypeStruct((M, N), out_dtype),
        grid_spec=pl.GridSpec(
            grid=(m_blocks, n_split),
            in_specs=[
                pl.BlockSpec((tm, K), lambda i, j: (i, 0)),                  # x rows
                pl.BlockSpec((K, nb), lambda i, j: (0, j), **const_kwargs),  # weight
                pl.BlockSpec((1, nb), lambda i, j: (0, j), **const_kwargs),  # bias
            ],
            out_specs=pl.BlockSpec((tm, nb), lambda i, j: (i, j)),
        ),
        compiler_params=pltpu.CompilerParams(
            dimension_semantics=("parallel", "parallel"),
            vmem_limit_bytes=vmem_limit_bytes,
        ),
        cost_estimate=cost,
    )(x, w, b2d)


def _reference(x, w, b):
    return jnp.maximum(x @ w + b[None, :], 0.0)


if __name__ == "__main__":
    # Small shapes consistent with TextNN(input_dim, output_dim); batch=10
    # deliberately exercises the masked partial-last-block path (no jnp.pad).
    batch, input_dim, output_dim = 10, 256, 128

    key = jax.random.PRNGKey(0)
    kx, kw, kb = jax.random.split(key, 3)
    x = jax.random.normal(kx, (batch, input_dim), dtype=jnp.float32)
    # PyTorch stores weight as [out, in]; the kernel consumes [in, out].
    w = jax.random.normal(kw, (input_dim, output_dim), dtype=jnp.float32) * 0.02
    b = jax.random.normal(kb, (output_dim,), dtype=jnp.float32) * 0.02

    ref = _reference(x, w, b)

    # f32 path.  Fall back gracefully if this JAX build rejects pl.Buffered(1).
    try:
        out = jax.block_until_ready(text_nn_forward(x, w, b))
        single_buf = True
    except Exception:
        single_buf = False
        out = jax.block_until_ready(
            text_nn_forward(x, w, b, single_buffer_consts=False))
    assert out.shape == (batch, output_dim)
    assert jnp.allclose(out, ref, atol=1e-4, rtol=1e-4), "f32 mismatch vs reference"

    # bf16-persisted-weight path: weight cast ONCE outside the per-call hot path;
    # x is cast to bf16 inside the kernel (no wrapper-side HBM pass).
    w_bf16 = w.astype(jnp.bfloat16)
    out_bf16 = jax.block_until_ready(
        text_nn_forward(x, w_bf16, b, single_buffer_consts=single_buf))
    assert out_bf16.shape == (batch, output_dim)
    assert bool(jnp.all(jnp.isfinite(out_bf16)))
    assert jnp.allclose(out_bf16, ref, atol=5e-2, rtol=5e-2), "bf16 mismatch vs reference"

    # N-split path (single M block, N % 256 == 0): exercises the two-block
    # weight/output tiling that feeds both TensorCores on v7x.
    output_dim2 = 256
    kw2, kb2 = jax.random.split(kb)
    w2 = jax.random.normal(kw2, (input_dim, output_dim2), dtype=jnp.float32) * 0.02
    b2 = jax.random.normal(kb2, (output_dim2,), dtype=jnp.float32) * 0.02
    ref2 = _reference(x, w2, b2)
    out2 = jax.block_until_ready(
        text_nn_forward(x, w2, b2, single_buffer_consts=single_buf))
    assert out2.shape == (batch, output_dim2)
    assert jnp.allclose(out2, ref2, atol=1e-4, rtol=1e-4), "N-split mismatch vs reference"

    print("KERNEL_OK")
</pallas_src>

<mosaic_0001>
module attributes {stable_mosaic.version = 11 : i64} {
  func.func @_linear_relu_kernel(%arg0: i32, %arg1: i32, %arg2: memref<16x256xf32, #tpu.memory_space<vmem>>, %arg3: memref<256x128xf32, #tpu.memory_space<vmem>>, %arg4: memref<1x128xf32, #tpu.memory_space<vmem>>, %arg5: memref<16x128xf32, #tpu.memory_space<vmem>>) attributes {dimension_semantics = [#tpu.dimension_semantics<parallel>, #tpu.dimension_semantics<parallel>], iteration_bounds = array<i64: 1, 1>, scalar_prefetch = 0 : i64, scratch_operands = 0 : i64, tpu.core_type = #tpu.core_type<tc>, window_params = [{transform_indices = @transform_0, window_bounds = array<i64: 16, 256>}, {pipeline_mode = #tpu.pipeline_mode<synchronous>, transform_indices = @transform_1, window_bounds = array<i64: 256, 128>}, {pipeline_mode = #tpu.pipeline_mode<synchronous>, transform_indices = @transform_2, window_bounds = array<i64: 1, 128>}, {transform_indices = @transform_3, window_bounds = array<i64: 16, 128>}]} {
    %c0 = arith.constant 0 : index
    %c0_0 = arith.constant 0 : index
    %0 = vector.load %arg2[%c0, %c0_0] : memref<16x256xf32, #tpu.memory_space<vmem>>, vector<16x256xf32>
    %c0_1 = arith.constant 0 : index
    %c0_2 = arith.constant 0 : index
    %1 = vector.load %arg3[%c0_1, %c0_2] : memref<256x128xf32, #tpu.memory_space<vmem>>, vector<256x128xf32>
    %cst = arith.constant dense<0.000000e+00> : vector<16x128xf32>
    %2 = tpu.matmul %0, %1, %cst {dimension_numbers = #tpu.dot_dimension_numbers<[1], [0], [0], [1], [0, 0, 1, 1], [], []>} : vector<16x256xf32>, vector<256x128xf32>, vector<16x128xf32> -> vector<16x128xf32>
    %c0_3 = arith.constant 0 : index
    %c0_4 = arith.constant 0 : index
    %3 = vector.load %arg4[%c0_3, %c0_4] : memref<1x128xf32, #tpu.memory_space<vmem>>, vector<1x128xf32>
    %4 = vector.broadcast %3 : vector<1x128xf32> to vector<16x128xf32>
    %5 = arith.addf %2, %4 : vector<16x128xf32>
    %cst_5 = arith.constant 0.000000e+00 : f32
    %6 = vector.broadcast %cst_5 : f32 to vector<16x128xf32>
    %7 = arith.maximumf %5, %6 : vector<16x128xf32>
    %c0_6 = arith.constant 0 : index
    %c0_7 = arith.constant 0 : index
    %8 = vector.load %arg5[%c0_6, %c0_7] : memref<16x128xf32, #tpu.memory_space<vmem>>, vector<16x128xf32>
    tpu.vector_store %arg5[%c0_6, %c0_7], %7 {strides = array<i32>} : memref<16x128xf32, #tpu.memory_space<vmem>>, vector<16x128xf32>,
    return
  }
  func.func @transform_0(%arg0: i32, %arg1: i32) -> (i32, i32) {
    %c0_i32 = arith.constant 0 : i32
    %c0_i32_0 = arith.constant 0 : i32
    return %arg0, %c0_i32 : i32, i32
  }
  func.func @transform_1(%arg0: i32, %arg1: i32) -> (i32, i32) {
    %c0_i32 = arith.constant 0 : i32
    %c0_i32_0 = arith.constant 0 : i32
    return %c0_i32, %arg1 : i32, i32
  }
  func.func @transform_2(%arg0: i32, %arg1: i32) -> (i32, i32) {
    %c0_i32 = arith.constant 0 : i32
    %c0_i32_0 = arith.constant 0 : i32
    return %c0_i32, %arg1 : i32, i32
  }
  func.func @transform_3(%arg0: i32, %arg1: i32) -> (i32, i32) {
    %c0_i32 = arith.constant 0 : i32
    return %arg0, %arg1 : i32, i32
  }
}

module attributes {stable_mosaic.version = 11 : i64} {
  func.func @_linear_relu_kernel(%arg0: i32, %arg1: i32, %arg2: memref<16x256xf32, #tpu.memory_space<vmem>>, %arg3: memref<256x128xf32, #tpu.memory_space<vmem>>, %arg4: memref<1x128xf32, #tpu.memory_space<vmem>>, %arg5: memref<16x128xf32, #tpu.memory_space<vmem>>) attributes {dimension_semantics = [#tpu.dimension_semantics<parallel>, #tpu.dimension_semantics<parallel>], iteration_bounds = array<i64: 1, 1>, scalar_prefetch = 0 : i64, scratch_operands = 0 : i64, tpu.core_type = #tpu.core_type<tc>, window_params = [{transform_indices = @transform_0, window_bounds = array<i64: 16, 256>}, {transform_indices = @transform_1, window_bounds = array<i64: 256, 128>}, {transform_indices = @transform_2, window_bounds = array<i64: 1, 128>}, {transform_indices = @transform_3, window_bounds = array<i64: 16, 128>}]} {
    %c0 = arith.constant 0 : index
    %c0_0 = arith.constant 0 : index
    %0 = vector.load %arg2[%c0, %c0_0] : memref<16x256xf32, #tpu.memory_space<vmem>>, vector<16x256xf32>
    %c0_1 = arith.constant 0 : index
    %c0_2 = arith.constant 0 : index
    %1 = vector.load %arg3[%c0_1, %c0_2] : memref<256x128xf32, #tpu.memory_space<vmem>>, vector<256x128xf32>
    %cst = arith.constant dense<0.000000e+00> : vector<16x128xf32>
    %2 = tpu.matmul %0, %1, %cst {dimension_numbers = #tpu.dot_dimension_numbers<[1], [0], [0], [1], [0, 0, 1, 1], [], []>} : vector<16x256xf32>, vector<256x128xf32>, vector<16x128xf32> -> vector<16x128xf32>
    %c0_3 = arith.constant 0 : index
    %c0_4 = arith.constant 0 : index
    %3 = vector.load %arg4[%c0_3, %c0_4] : memref<1x128xf32, #tpu.memory_space<vmem>>, vector<1x128xf32>
    %4 = vector.broadcast %3 : vector<1x128xf32> to vector<16x128xf32>
    %5 = arith.addf %2, %4 : vector<16x128xf32>
    %cst_5 = arith.constant 0.000000e+00 : f32
    %6 = vector.broadcast %cst_5 : f32 to vector<16x128xf32>
    %7 = arith.maximumf %5, %6 : vector<16x128xf32>
    %c0_6 = arith.constant 0 : index
    %c0_7 = arith.constant 0 : index
    %8 = vector.load %arg5[%c0_6, %c0_7] : memref<16x128xf32, #tpu.memory_space<vmem>>, vector<16x128xf32>
    tpu.vector_store %arg5[%c0_6, %c0_7], %7 {strides = array<i32>} : memref<16x128xf32, #tpu.memory_space<vmem>>, vector<16x128xf32>,
    return
  }
  func.func @transform_0(%arg0: i32, %arg1: i32) -> (i32, i32) {
    %c0_i32 = arith.constant 0 : i32
    %c0_i32_0 = arith.constant 0 : i32
    return %arg0, %c0_i32 : i32, i32
  }
  func.func @transform_1(%arg0: i32, %arg1: i32) -> (i32, i32) {
    %c0_i32 = arith.constant 0 : i32
    %c0_i32_0 = arith.constant 0 : i32
    return %c0_i32, %arg1 : i32, i32
  }
  func.func @transform_2(%arg0: i32, %arg1: i32) -> (i32, i32) {
    %c0_i32 = arith.constant 0 : i32
    %c0_i32_0 = arith.constant 0 : i32
    return %c0_i32, %arg1 : i32, i32
  }
  func.func @transform_3(%arg0: i32, %arg1: i32) -> (i32, i32) {
    %c0_i32 = arith.constant 0 : i32
    return %arg0, %arg1 : i32, i32
  }
}

</mosaic_0001>

<bundles_post_ra>
// kernel: text_nn_forward.1
= control target key start
LH: loop header
LB: loop body
LE: loop exit
PB: predicated region body
PF: predicated region fallthrough
CT: control target
= control target key end

     0   :  { %8 = vsyncpa [#allocation3], 0  ;;  %s320_s0 = inlined_call_operand.hbm [shape: f32[10,256], index: 0, kind: input, shape index: {}]   ;;  %s321_s1 = inlined_call_operand.hbm [shape: f32[256,128], index: 1, kind: input, shape index: {}]   ;;  %s322_s2 = inlined_call_operand.vmem [shape: f32[1,128], index: 2, kind: input, shape index: {}]   ;;  %s323_s3 = inlined_call_operand.hbm [shape: f32[10,128], index: 3, kind: output, shape index: {}]  }
   0x1   :  { %9 = vsyncpa [#allocation6], 0 }
   0x2   :  { %10 = vsyncpa [#allocation4], 0  ;;  %s15_s14 = sshll.u32 %s320_s0, 4  ;;  %s275_s15 = smov [#allocation2]   ;;  %s16_s14 = int_to_ptr.hbm [resolvable:$true] %s15_s14 }
   0x3   :  { %s17_s16 = sshll.u32 %s275_s15, 4  ;;  %s28_s19 = sshll.u32 %s321_s1, 4  ;;  %s18_s16 = int_to_ptr.vmem [resolvable:$true] %s17_s16  ;;  %s29_s19 = int_to_ptr.hbm [resolvable:$true] %s28_s19 }
   0x4   :  { %s276_s20 = smov 256   ;;  %s277_s21 = smov 16  }
   0x5   :  { %23 = dma.hbm_to_vmem [thread:$0]  %s16_s14, 512, %s18_s16, [#allocation3], %s276_s20, %s276_s20, %s277_s21  }
   0x6   :  { %s278_s22 = smov [#allocation5]   ;;  %s279_s24 = smov 128  }
   0x7   :  { %s30_s23 = sshll.u32 %s278_s22, 4  ;;  %s280_s25 = smov 8   ;;  %s31_s23 = int_to_ptr.vmem [resolvable:$true] %s30_s23 }
   0x8   :  { %36 = dma.hbm_to_vmem [thread:$0]  %s29_s19, 4096, %s31_s23, [#allocation6], %s279_s24, %s279_s24, %s280_s25  }
   0x9   :  { %269 = dma.done.wait [#allocation3], 512  }
   0xa   :  { %270 = vsyncadd [#allocation3], 4294966784 }
   0xb   :  { %271 = dma.done.wait [#allocation6], 4096  }
   0xc   :  { %272 = vsyncadd [#allocation6], 4294963200  ;;  %v66_v0 = vld [vmem:[#allocation5 + $0x78] sm:$0xff]  ;;  %v65_v1 = vld [vmem:[#allocation5 + $0x70] sm:$0xff]  ;;  %s281_s26 = smov [#allocation7]   ;;  %s143_s30 = sshll.u32 %s323_s3, 4  ;;  %s144_s30 = int_to_ptr.hbm [resolvable:$true] %s143_s30 }
   0xd   :  { %v82_v2 = vld [vmem:[#allocation5 + $0xf8] sm:$0xff]  ;;  %157 = vmatpush.msra.mxu2 %v66_v0  ;;  %v81_v3 = vld [vmem:[#allocation5 + $0xf0] sm:$0xff]  ;;  %v64_v4 = vld [vmem:[#allocation5 + $0x68] sm:$0xff]  ;;  %87 = vmatpush.msra.mxu0 %v66_v0  ;;  %s141_s27 = sshll.u32 %s281_s26, 4  ;;  %s142_s27 = int_to_ptr.vmem [resolvable:$true] %s141_s27 }
   0xe   :  { %173 = vmatpush.msra.mxu3 %v82_v2  ;;  %v80_v5 = vld [vmem:[#allocation5 + $0xe8] sm:$0xff]  ;;  %110 = vmatpush.msra.mxu1 %v82_v2  ;;  %v63_v6 = vld [vmem:[#allocation5 + $0x60] sm:$0xff]  ;;  %v62_v8 = vld [vmem:[#allocation5 + $0x58] sm:$0xff] }
   0xf   :  { %158 = vmatpush.msra.mxu2 %v65_v1  ;;  %88 = vmatpush.msra.mxu0 %v65_v1  ;;  %v79_v7 = vld [vmem:[#allocation5 + $0xe0] sm:$0xff]  ;;  %v78_v9 = vld [vmem:[#allocation5 + $0xd8] sm:$0xff]  ;;  %v61_v10 = vld [vmem:[#allocation5 + $0x50] sm:$0xff] }
  0x10   :  { %174 = vmatpush.msra.mxu3 %v81_v3  ;;  %111 = vmatpush.msra.mxu1 %v81_v3  ;;  %v77_v11 = vld [vmem:[#allocation5 + $0xd0] sm:$0xff]  ;;  %v60_v12 = vld [vmem:[#allocation5 + $0x48] sm:$0xff]  ;;  %v59_v14 = vld [vmem:[#allocation5 + $0x40] sm:$0xff] }
  0x11   :  { %159 = vmatpush.msra.mxu2 %v64_v4  ;;  %89 = vmatpush.msra.mxu0 %v64_v4  ;;  %v76_v13 = vld [vmem:[#allocation5 + $0xc8] sm:$0xff]  ;;  %v75_v15 = vld [vmem:[#allocation5 + $0xc0] sm:$0xff]  ;;  %v58_v16 = vld [vmem:[#allocation5 + $0x38] sm:$0xff] }
  0x12   :  { %175 = vmatpush.msra.mxu3 %v80_v5  ;;  %112 = vmatpush.msra.mxu1 %v80_v5  ;;  %v74_v17 = vld [vmem:[#allocation5 + $0xb8] sm:$0xff]  ;;  %v57_v18 = vld [vmem:[#allocation5 + $0x30] sm:$0xff]  ;;  %v56_v20 = vld [vmem:[#allocation5 + $0x28] sm:$0xff] }
  0x13   :  { %160 = vmatpush.msra.mxu2 %v63_v6  ;;  %90 = vmatpush.msra.mxu0 %v63_v6  ;;  %v73_v19 = vld [vmem:[#allocation5 + $0xb0] sm:$0xff]  ;;  %v72_v21 = vld [vmem:[#allocation5 + $0xa8] sm:$0xff]  ;;  %v55_v22 = vld [vmem:[#allocation5 + $0x20] sm:$0xff] }
  0x14   :  { %176 = vmatpush.msra.mxu3 %v79_v7  ;;  %113 = vmatpush.msra.mxu1 %v79_v7  ;;  %v71_v23 = vld [vmem:[#allocation5 + $0xa0] sm:$0xff]  ;;  %v54_v24 = vld [vmem:[#allocation5 + $0x18] sm:$0xff]  ;;  %v53_v26 = vld [vmem:[#allocation5 + $0x10] sm:$0xff] }
  0x15   :  { %161 = vmatpush.msra.mxu2 %v62_v8  ;;  %91 = vmatpush.msra.mxu0 %v62_v8  ;;  %v70_v25 = vld [vmem:[#allocation5 + $0x98] sm:$0xff]  ;;  %v69_v27 = vld [vmem:[#allocation5 + $0x90] sm:$0xff]  ;;  %v52_v28 = vld [vmem:[#allocation5 + $0x8] sm:$0xff] }
  0x16   :  { %177 = vmatpush.msra.mxu3 %v78_v9  ;;  %114 = vmatpush.msra.mxu1 %v78_v9  ;;  %v68_v29 = vld [vmem:[#allocation5 + $0x88] sm:$0xff]  ;;  %v51_v30 = vld [vmem:[#allocation5] sm:$0xff]  ;;  %v49_v32 = vld [vmem:[#allocation2 + $0x10] sm:$0xff] }
  0x17   :  { %162 = vmatpush.msra.mxu2 %v61_v10  ;;  %92 = vmatpush.msra.mxu0 %v61_v10  ;;  %v67_v31 = vld [vmem:[#allocation5 + $0x80] sm:$0xff]  ;;  %v50_v33 = vld [vmem:[#allocation2 + $0x18] sm:$0xff]  ;;  %v48_v35 = vld [vmem:[#allocation2 + $0x8] sm:$0xff] }
  0x18   :  { %178 = vmatpush.msra.mxu3 %v77_v11  ;;  %115 = vmatpush.msra.mxu1 %v77_v11  ;;  %v47_v34 = vld [vmem:[#allocation2] sm:$0xff] }
  0x19   :  { %163 = vmatpush.msra.mxu2 %v60_v12  ;;  %93 = vmatpush.msra.mxu0 %v60_v12  ;;  %v196_v36 = vld [vmem:[%s322_s2] ss:$0 sm:$0xff] }
  0x1a   :  { %179 = vmatpush.msra.mxu3 %v76_v13  ;;  %116 = vmatpush.msra.mxu1 %v76_v13 }
  0x1b   :  { %164 = vmatpush.msra.mxu2 %v59_v14  ;;  %94 = vmatpush.msra.mxu0 %v59_v14 }
  0x1c   :  { %180 = vmatpush.msra.mxu3 %v75_v15  ;;  %117 = vmatpush.msra.mxu1 %v75_v15 }
  0x1d   :  { %165 = vmatpush.msra.mxu2 %v58_v16  ;;  %95 = vmatpush.msra.mxu0 %v58_v16 }
  0x1e   :  { %181 = vmatpush.msra.mxu3 %v74_v17  ;;  %118 = vmatpush.msra.mxu1 %v74_v17 }
  0x1f   :  { %166 = vmatpush.msra.mxu2 %v57_v18  ;;  %96 = vmatpush.msra.mxu0 %v57_v18 }
  0x20   :  { %182 = vmatpush.msra.mxu3 %v73_v19  ;;  %119 = vmatpush.msra.mxu1 %v73_v19 }
  0x21   :  { %167 = vmatpush.msra.mxu2 %v56_v20  ;;  %97 = vmatpush.msra.mxu0 %v56_v20 }
  0x22   :  { %183 = vmatpush.msra.mxu3 %v72_v21  ;;  %120 = vmatpush.msra.mxu1 %v72_v21 }
  0x23   :  { %168 = vmatpush.msra.mxu2 %v55_v22  ;;  %98 = vmatpush.msra.mxu0 %v55_v22 }
  0x24   :  { %184 = vmatpush.msra.mxu3 %v71_v23  ;;  %121 = vmatpush.msra.mxu1 %v71_v23 }
  0x25   :  { %169 = vmatpush.msra.mxu2 %v54_v24  ;;  %99 = vmatpush.msra.mxu0 %v54_v24 }
  0x26   :  { %185 = vmatpush.msra.mxu3 %v70_v25  ;;  %122 = vmatpush.msra.mxu1 %v70_v25 }
  0x27   :  { %170 = vmatpush.msra.mxu2 %v53_v26  ;;  %100 = vmatpush.msra.mxu0 %v53_v26 }
  0x28   :  { %186 = vmatpush.msra.mxu3 %v69_v27  ;;  %123 = vmatpush.msra.mxu1 %v69_v27 }
  0x29   :  { %171 = vmatpush.msra.mxu2 %v52_v28  ;;  %101 = vmatpush.msra.mxu0 %v52_v28 }
  0x2a   :  { %187 = vmatpush.msra.mxu3 %v68_v29  ;;  %124 = vmatpush.msra.mxu1 %v68_v29 }
  0x2b   :  { %172 = vmatpush.msra.mxu2 %v51_v30  ;;  %102 = vmatpush.msra.mxu0 %v51_v30 }
  0x2c   :  { %188 = vmatpush.msra.mxu3 %v67_v31  ;;  %106 = vmatmul.f32.vlgmr.msra.gmra.mxu2 %v49_v32 }
  0x2d   :  { %129 = vmatmul.f32.vlgmr.msra.gmra.mxu3 %v50_v33  ;;  %125 = vmatpush.msra.mxu1 %v67_v31 }
  0x2e   :  { %103 = vmatmul.f32.vlgmr.msra.gmra.mxu0 %v47_v34  ;;  %126 = vmatmul.f32.vlgmr.msra.gmra.mxu1 %v48_v35 }
  0xab   :  { %v104_v37 = vpop.f32.mrf.mxu0  ;;  %v127_v38 = vpop.f32.mrf.mxu1 }
  0xac   :  { %v105_v39 = vadd.f32 %v196_v36, %v104_v37 }
  0xae   :  { %v128_v40 = vadd.f32 %v127_v38, %v105_v39 }
  0xaf   :  { %v107_v41 = vpop.f32.mrf.mxu2 }
  0xb0   :  { %v130_v42 = vpop.f32.mrf.mxu3  ;;  %v108_v43 = vadd.f32 %v196_v36, %v107_v41  ;;  %v133_v44 = vmax.f32 %v128_v40, 0.0 }
  0xb2   :  { %135 = vst [vmem:[#allocation7] sm:$0xff] %v133_v44  ;;  %v131_v45 = vadd.f32 %v130_v42, %v108_v43 }
  0xb4   :  { %v134_v46 = vmax.f32 %v131_v45, 0.0 }
  0xb6   :  { %136 = vst [vmem:[#allocation7 + $0x8] sm:$0xff] %v134_v46 }
  0xb7   :  { %149 = dma.vmem_to_hbm [thread:$0]  %s142_s27, 256, %s144_s30, [#allocation4], %s279_s24, %s279_s24, %s280_s25  }
  0xb8   :  { %273 = dma.done.wait [#allocation4], 256  }
  0xb9   :  { %274 = vsyncadd [#allocation4], 4294967040 }
  0xba   :  { %154 = vsyncpa [#allocation3], 1 }
  0xbb   :  { %155 = vsyncpa [#allocation6], 1 }
  0xbc   :  { %156 = vsyncpa [#allocation4], 1 }

// kernel: text_nn_forward.1
= control target key start
LH: loop header
LB: loop body
LE: loop exit
PB: predicated region body
PF: predicated region fallthrough
CT: control target
= control target key end

     0   :  { %8 = vsyncpa [#allocation3], 0  ;;  %s320_s0 = inlined_call_operand.hbm [shape: f32[10,256], index: 0, kind: input, shape index: {}]   ;;  %s321_s1 = inlined_call_operand.hbm [shape: f32[256,128], index: 1, kind: input, shape index: {}]   ;;  %s322_s2 = inlined_call_operand.vmem [shape: f32[1,128], index: 2, kind: input, shape index: {}]   ;;  %s323_s3 = inlined_call_operand.hbm [shape: f32[10,128], index: 3, kind: output, shape index: {}]  }
   0x1   :  { %9 = vsyncpa [#allocation6], 0 }
   0x2   :  { %10 = vsyncpa [#allocation4], 0  ;;  %s15_s14 = sshll.u32 %s320_s0, 4  ;;  %s275_s15 = smov [#allocation2]   ;;  %s16_s14 = int_to_ptr.hbm [resolvable:$true] %s15_s14 }
   0x3   :  { %s17_s16 = sshll.u32 %s275_s15, 4  ;;  %s28_s19 = sshll.u32 %s321_s1, 4  ;;  %s18_s16 = int_to_ptr.vmem [resolvable:$true] %s17_s16  ;;  %s29_s19 = int_to_ptr.hbm [resolvable:$true] %s28_s19 }
   0x4   :  { %s276_s20 = smov 256   ;;  %s277_s21 = smov 16  }
   0x5   :  { %23 = dma.hbm_to_vmem [thread:$0]  %s16_s14, 512, %s18_s16, [#allocation3], %s276_s20, %s276_s20, %s277_s21  }
   0x6   :  { %s278_s22 = smov [#allocation5]   ;;  %s279_s24 = smov 128  }
   0x7   :  { %s30_s23 = sshll.u32 %s278_s22, 4  ;;  %s280_s25 = smov 8   ;;  %s31_s23 = int_to_ptr.vmem [resolvable:$true] %s30_s23 }
   0x8   :  { %36 = dma.hbm_to_vmem [thread:$0]  %s29_s19, 4096, %s31_s23, [#allocation6], %s279_s24, %s279_s24, %s280_s25  }
   0x9   :  { %269 = dma.done.wait [#allocation3], 512  }
   0xa   :  { %270 = vsyncadd [#allocation3], 4294966784 }
   0xb   :  { %271 = dma.done.wait [#allocation6], 4096  }
   0xc   :  { %272 = vsyncadd [#allocation6], 4294963200  ;;  %v66_v0 = vld [vmem:[#allocation5 + $0x78] sm:$0xff]  ;;  %v65_v1 = vld [vmem:[#allocation5 + $0x70] sm:$0xff]  ;;  %s281_s26 = smov [#allocation7]   ;;  %s143_s30 = sshll.u32 %s323_s3, 4  ;;  %s144_s30 = int_to_ptr.hbm [resolvable:$true] %s143_s30 }
   0xd   :  { %v82_v2 = vld [vmem:[#allocation5 + $0xf8] sm:$0xff]  ;;  %157 = vmatpush.msra.mxu2 %v66_v0  ;;  %v81_v3 = vld [vmem:[#allocation5 + $0xf0] sm:$0xff]  ;;  %v64_v4 = vld [vmem:[#allocation5 + $0x68] sm:$0xff]  ;;  %87 = vmatpush.msra.mxu0 %v66_v0  ;;  %s141_s27 = sshll.u32 %s281_s26, 4  ;;  %s142_s27 = int_to_ptr.vmem [resolvable:$true] %s141_s27 }
   0xe   :  { %173 = vmatpush.msra.mxu3 %v82_v2  ;;  %v80_v5 = vld [vmem:[#allocation5 + $0xe8] sm:$0xff]  ;;  %110 = vmatpush.msra.mxu1 %v82_v2  ;;  %v63_v6 = vld [vmem:[#allocation5 + $0x60] sm:$0xff]  ;;  %v62_v8 = vld [vmem:[#allocation5 + $0x58] sm:$0xff] }
   0xf   :  { %158 = vmatpush.msra.mxu2 %v65_v1  ;;  %88 = vmatpush.msra.mxu0 %v65_v1  ;;  %v79_v7 = vld [vmem:[#allocation5 + $0xe0] sm:$0xff]  ;;  %v78_v9 = vld [vmem:[#allocation5 + $0xd8] sm:$0xff]  ;;  %v61_v10 = vld [vmem:[#allocation5 + $0x50] sm:$0xff] }
  0x10   :  { %174 = vmatpush.msra.mxu3 %v81_v3  ;;  %111 = vmatpush.msra.mxu1 %v81_v3  ;;  %v77_v11 = vld [vmem:[#allocation5 + $0xd0] sm:$0xff]  ;;  %v60_v12 = vld [vmem:[#allocation5 + $0x48] sm:$0xff]  ;;  %v59_v14 = vld [vmem:[#allocation5 + $0x40] sm:$0xff] }
  0x11   :  { %159 = vmatpush.msra.mxu2 %v64_v4  ;;  %89 = vmatpush.msra.mxu0 %v64_v4  ;;  %v76_v13 = vld [vmem:[#allocation5 + $0xc8] sm:$0xff]  ;;  %v75_v15 = vld [vmem:[#allocation5 + $0xc0] sm:$0xff]  ;;  %v58_v16 = vld [vmem:[#allocation5 + $0x38] sm:$0xff] }
  0x12   :  { %175 = vmatpush.msra.mxu3 %v80_v5  ;;  %112 = vmatpush.msra.mxu1 %v80_v5  ;;  %v74_v17 = vld [vmem:[#allocation5 + $0xb8] sm:$0xff]  ;;  %v57_v18 = vld [vmem:[#allocation5 + $0x30] sm:$0xff]  ;;  %v56_v20 = vld [vmem:[#allocation5 + $0x28] sm:$0xff] }
  0x13   :  { %160 = vmatpush.msra.mxu2 %v63_v6  ;;  %90 = vmatpush.msra.mxu0 %v63_v6  ;;  %v73_v19 = vld [vmem:[#allocation5 + $0xb0] sm:$0xff]  ;;  %v72_v21 = vld [vmem:[#allocation5 + $0xa8] sm:$0xff]  ;;  %v55_v22 = vld [vmem:[#allocation5 + $0x20] sm:$0xff] }
  0x14   :  { %176 = vmatpush.msra.mxu3 %v79_v7  ;;  %113 = vmatpush.msra.mxu1 %v79_v7  ;;  %v71_v23 = vld [vmem:[#allocation5 + $0xa0] sm:$0xff]  ;;  %v54_v24 = vld [vmem:[#allocation5 + $0x18] sm:$0xff]  ;;  %v53_v26 = vld [vmem:[#allocation5 + $0x10] sm:$0xff] }
  0x15   :  { %161 = vmatpush.msra.mxu2 %v62_v8  ;;  %91 = vmatpush.msra.mxu0 %v62_v8  ;;  %v70_v25 = vld [vmem:[#allocation5 + $0x98] sm:$0xff]  ;;  %v69_v27 = vld [vmem:[#allocation5 + $0x90] sm:$0xff]  ;;  %v52_v28 = vld [vmem:[#allocation5 + $0x8] sm:$0xff] }
  0x16   :  { %177 = vmatpush.msra.mxu3 %v78_v9  ;;  %114 = vmatpush.msra.mxu1 %v78_v9  ;;  %v68_v29 = vld [vmem:[#allocation5 + $0x88] sm:$0xff]  ;;  %v51_v30 = vld [vmem:[#allocation5] sm:$0xff]  ;;  %v49_v32 = vld [vmem:[#allocation2 + $0x10] sm:$0xff] }
  0x17   :  { %162 = vmatpush.msra.mxu2 %v61_v10  ;;  %92 = vmatpush.msra.mxu0 %v61_v10  ;;  %v67_v31 = vld [vmem:[#allocation5 + $0x80] sm:$0xff]  ;;  %v50_v33 = vld [vmem:[#allocation2 + $0x18] sm:$0xff]  ;;  %v48_v35 = vld [vmem:[#allocation2 + $0x8] sm:$0xff] }
  0x18   :  { %178 = vmatpush.msra.mxu3 %v77_v11  ;;  %115 = vmatpush.msra.mxu1 %v77_v11  ;;  %v47_v34 = vld [vmem:[#allocation2] sm:$0xff] }
  0x19   :  { %163 = vmatpush.msra.mxu2 %v60_v12  ;;  %93 = vmatpush.msra.mxu0 %v60_v12  ;;  %v196_v36 = vld [vmem:[%s322_s2] ss:$0 sm:$0xff] }
  0x1a   :  { %179 = vmatpush.msra.mxu3 %v76_v13  ;;  %116 = vmatpush.msra.mxu1 %v76_v13 }
  0x1b   :  { %164 = vmatpush.msra.mxu2 %v59_v14  ;;  %94 = vmatpush.msra.mxu0 %v59_v14 }
  0x1c   :  { %180 = vmatpush.msra.mxu3 %v75_v15  ;;  %117 = vmatpush.msra.mxu1 %v75_v15 }
  0x1d   :  { %165 = vmatpush.msra.mxu2 %v58_v16  ;;  %95 = vmatpush.msra.mxu0 %v58_v16 }
  0x1e   :  { %181 = vmatpush.msra.mxu3 %v74_v17  ;;  %118 = vmatpush.msra.mxu1 %v74_v17 }
  0x1f   :  { %166 = vmatpush.msra.mxu2 %v57_v18  ;;  %96 = vmatpush.msra.mxu0 %v57_v18 }
  0x20   :  { %182 = vmatpush.msra.mxu3 %v73_v19  ;;  %119 = vmatpush.msra.mxu1 %v73_v19 }
  0x21   :  { %167 = vmatpush.msra.mxu2 %v56_v20  ;;  %97 = vmatpush.msra.mxu0 %v56_v20 }
  0x22   :  { %183 = vmatpush.msra.mxu3 %v72_v21  ;;  %120 = vmatpush.msra.mxu1 %v72_v21 }
  0x23   :  { %168 = vmatpush.msra.mxu2 %v55_v22  ;;  %98 = vmatpush.msra.mxu0 %v55_v22 }
  0x24   :  { %184 = vmatpush.msra.mxu3 %v71_v23  ;;  %121 = vmatpush.msra.mxu1 %v71_v23 }
  0x25   :  { %169 = vmatpush.msra.mxu2 %v54_v24  ;;  %99 = vmatpush.msra.mxu0 %v54_v24 }
  0x26   :  { %185 = vmatpush.msra.mxu3 %v70_v25  ;;  %122 = vmatpush.msra.mxu1 %v70_v25 }
  0x27   :  { %170 = vmatpush.msra.mxu2 %v53_v26  ;;  %100 = vmatpush.msra.mxu0 %v53_v26 }
  0x28   :  { %186 = vmatpush.msra.mxu3 %v69_v27  ;;  %123 = vmatpush.msra.mxu1 %v69_v27 }
  0x29   :  { %171 = vmatpush.msra.mxu2 %v52_v28  ;;  %101 = vmatpush.msra.mxu0 %v52_v28 }
  0x2a   :  { %187 = vmatpush.msra.mxu3 %v68_v29  ;;  %124 = vmatpush.msra.mxu1 %v68_v29 }
  0x2b   :  { %172 = vmatpush.msra.mxu2 %v51_v30  ;;  %102 = vmatpush.msra.mxu0 %v51_v30 }
  0x2c   :  { %188 = vmatpush.msra.mxu3 %v67_v31  ;;  %106 = vmatmul.f32.vlgmr.msra.gmra.mxu2 %v49_v32 }
  0x2d   :  { %129 = vmatmul.f32.vlgmr.msra.gmra.mxu3 %v50_v33  ;;  %125 = vmatpush.msra.mxu1 %v67_v31 }
  0x2e   :  { %103 = vmatmul.f32.vlgmr.msra.gmra.mxu0 %v47_v34  ;;  %126 = vmatmul.f32.vlgmr.msra.gmra.mxu1 %v48_v35 }
  0xab   :  { %v104_v37 = vpop.f32.mrf.mxu0  ;;  %v127_v38 = vpop.f32.mrf.mxu1 }
  0xac   :  { %v105_v39 = vadd.f32 %v196_v36, %v104_v37 }
  0xae   :  { %v128_v40 = vadd.f32 %v127_v38, %v105_v39 }
  0xaf   :  { %v107_v41 = vpop.f32.mrf.mxu2 }
  0xb0   :  { %v130_v42 = vpop.f32.mrf.mxu3  ;;  %v108_v43 = vadd.f32 %v196_v36, %v107_v41  ;;  %v133_v44 = vmax.f32 %v128_v40, 0.0 }
  0xb2   :  { %135 = vst [vmem:[#allocation7] sm:$0xff] %v133_v44  ;;  %v131_v45 = vadd.f32 %v130_v42, %v108_v43 }
  0xb4   :  { %v134_v46 = vmax.f32 %v131_v45, 0.0 }
  0xb6   :  { %136 = vst [vmem:[#allocation7 + $0x8] sm:$0xff] %v134_v46 }
  0xb7   :  { %149 = dma.vmem_to_hbm [thread:$0]  %s142_s27, 256, %s144_s30, [#allocation4], %s279_s24, %s279_s24, %s280_s25  }
  0xb8   :  { %273 = dma.done.wait [#allocation4], 256  }
  0xb9   :  { %274 = vsyncadd [#allocation4], 4294967040 }
  0xba   :  { %154 = vsyncpa [#allocation3], 1 }
  0xbb   :  { %155 = vsyncpa [#allocation6], 1 }
  0xbc   :  { %156 = vsyncpa [#allocation4], 1 }

</bundles_post_ra>
